<compile_context>
chip_gen: v7x
topology: tpu7x:2x2x1
jax: 0.10.0
libtpu: 0.0.40
codegen_flags: <defaults>
</compile_context>

<pallas_src>
import functools

import jax
import jax.numpy as jnp
from jax import lax
from jax.experimental import pallas as pl
from jax.experimental.pallas import tpu as pltpu

LANE = 128


def _round_up(n, m):
    return ((n + m - 1) // m) * m


def _vmem_capacity_bytes():
    try:
        info = pltpu.get_tpu_info()
        cap = getattr(info, "vmem_capacity_bytes", None)
        if cap:
            return int(cap)
    except Exception:
        pass
    return 128 * 1024 * 1024  # v5e/v6e physical VMEM fallback


def _choose_block_b(B, block_b):
    """Pick the batch tile: large (amortize ~0.35us/step), multiple of 128 rows,
    and guaranteeing >= 2 grid steps when B >= 256 so both v7x TCs get work."""
    if B >= 256:
        half = _round_up(pl.cdiv(B, 2), 128)
        bb = min(block_b, half)
        return max(128, _round_up(bb, 128))
    return max(16, _round_up(B, 16))


def _layernorm_padded(h, n_real, eps=1e-8):
    """LayerNorm over the first `n_real` columns of h, mask-free.

    Padded columns of h are structurally zero (zero-padded weight columns and
    biases), so sums over the padded width equal sums over the real width.
    var = E[h^2] - mean^2 (biased), eps added to the variance — matches
    torch.nn.LayerNorm(n_real, elementwise_affine=False, eps=eps).
    Padded columns of the result are NOT zeroed; they only ever multiply
    zero-padded weight rows downstream, so they never affect the output.
    """
    inv_n = 1.0 / float(n_real)
    mean = jnp.sum(h, axis=-1, keepdims=True) * inv_n
    mean_sq = jnp.sum(h * h, axis=-1, keepdims=True) * inv_n
    var = jnp.maximum(mean_sq - mean * mean, 0.0)
    return (h - mean) * lax.rsqrt(var + eps)


def mlp_kernel(x_ref, w1_ref, b1_ref, w2_ref, b2_ref, w3_ref, b3_ref, o_ref, *, h_real):
    mxu_dtype = w1_ref.dtype  # bf16 (or f32 if use_bf16=False)

    # Layer 1: Linear -> LayerNorm -> ReLU   (Dropout p=0 => identity)
    x = x_ref[...].astype(mxu_dtype)
    h = jnp.dot(x, w1_ref[...], preferred_element_type=jnp.float32) + b1_ref[...]
    h = _layernorm_padded(h, h_real)
    h = jnp.maximum(h, 0.0)

    # Layer 2: Linear -> LayerNorm -> ReLU   (Dropout p=0 => identity)
    h = jnp.dot(h.astype(mxu_dtype), w2_ref[...], preferred_element_type=jnp.float32) + b2_ref[...]
    h = _layernorm_padded(h, h_real)
    h = jnp.maximum(h, 0.0)

    # Output layer: unpadded N so the store is the minimal HBM writeback.
    o = jnp.dot(h.astype(mxu_dtype), w3_ref[...], preferred_element_type=jnp.float32) + b3_ref[...]
    o_ref[...] = o.astype(o_ref.dtype)


def prepare_mlp_params(w1, b1, w2, b2, w3, b3, use_bf16=True):
    """Pad (hidden dim -> multiple of 128 lanes) and cast weights ONCE, outside
    the per-call path. Output feature dim is intentionally left unpadded."""
    F_in, H = w1.shape
    F_out = w3.shape[1]
    H_pad = _round_up(H, LANE)
    mxu_dtype = jnp.bfloat16 if use_bf16 else jnp.float32

    def pad_w(w, rows, cols):
        w = w.astype(mxu_dtype)
        return jnp.pad(w, ((0, rows - w.shape[0]), (0, cols - w.shape[1])))

    def pad_b(b, cols):
        b = jnp.reshape(b, (1, -1)).astype(jnp.float32)
        return jnp.pad(b, ((0, 0), (0, cols - b.shape[1])))

    params = (
        pad_w(w1, F_in, H_pad),
        pad_b(b1, H_pad),
        pad_w(w2, H_pad, H_pad),
        pad_b(b2, H_pad),
        pad_w(w3, H_pad, F_out),   # rows padded to H_pad, real F_out columns
        pad_b(b3, F_out),
    )
    return params, H


@functools.partial(jax.jit, static_argnames=("h_real", "block_b"))
def mlp_pallas_prepared(x, w1p, b1p, w2p, b2p, w3p, b3p, *, h_real, block_b=2048):
    B, F_in = x.shape
    H_pad = w1p.shape[1]
    F_out = w3p.shape[1]
    mxu_itemsize = jnp.dtype(w1p.dtype).itemsize
    out_dtype = x.dtype
    out_itemsize = jnp.dtype(out_dtype).itemsize

    block_b = _choose_block_b(B, int(block_b))
    grid = (pl.cdiv(B, block_b),)

    # Constant-index parameter blocks -> single buffer (never re-fetched).
    def param_spec(shape):
        return pl.BlockSpec(shape, lambda i: (0, 0), pipeline_mode=pl.Buffered(1))

    # VMEM budget: single-buffered params + double-buffered x/out tiles + headroom,
    # capped at 80% of physical VMEM (leaves scratch headroom, esp. on v7x 64 MiB).
    param_bytes = (w1p.size + w2p.size + w3p.size) * mxu_itemsize \
        + (b1p.size + b2p.size + b3p.size) * 4
    tile_bytes = 2 * block_b * F_in * x.dtype.itemsize + 2 * block_b * F_out * out_itemsize
    interm_bytes = 6 * block_b * H_pad * 4
    vmem_cap = _vmem_capacity_bytes()
    vmem_limit = int(min(int(vmem_cap * 0.8),
                         max(16 * 1024 * 1024,
                             2 * (param_bytes + tile_bytes + interm_bytes))))

    flops = 2 * B * (F_in * H_pad + H_pad * H_pad + H_pad * F_out)
    bytes_accessed = x.size * x.dtype.itemsize + param_bytes + B * F_out * out_itemsize

    return pl.pallas_call(
        functools.partial(mlp_kernel, h_real=h_real),
        out_shape=jax.ShapeDtypeStruct((B, F_out), out_dtype),
        grid_spec=pltpu.PrefetchScalarGridSpec(
            num_scalar_prefetch=0,
            grid=grid,
            in_specs=[
                pl.BlockSpec((block_b, F_in), lambda i: (i, 0)),  # x tile over batch
                param_spec((F_in, H_pad)),
                param_spec((1, H_pad)),
                param_spec((H_pad, H_pad)),
                param_spec((1, H_pad)),
                param_spec((H_pad, F_out)),
                param_spec((1, F_out)),
            ],
            out_specs=pl.BlockSpec((block_b, F_out), lambda i: (i, 0)),
        ),
        compiler_params=pltpu.CompilerParams(
            dimension_semantics=("parallel",),
            vmem_limit_bytes=vmem_limit,
        ),
        cost_estimate=pl.CostEstimate(
            flops=int(flops),
            transcendentals=int(2 * B),
            bytes_accessed=int(bytes_accessed),
        ),
    )(x, w1p, b1p, w2p, b2p, w3p, b3p)


def mlp_pallas(x, w1, b1, w2, b2, w3, b3, *, block_b=2048, use_bf16=True):
    """Convenience wrapper: prepare params once, then call the jitted kernel."""
    params, h_real = prepare_mlp_params(w1, b1, w2, b2, w3, b3, use_bf16=use_bf16)
    return mlp_pallas_prepared(x, *params, h_real=h_real, block_b=block_b)


# ----------------------------- references ------------------------------------


def _layernorm_ref(h, eps=1e-8):
    mean = jnp.mean(h, axis=-1, keepdims=True)
    c = h - mean
    var = jnp.mean(c * c, axis=-1, keepdims=True)
    return c * lax.rsqrt(var + eps)


def mlp_reference(x, w1, b1, w2, b2, w3, b3, mxu_dtype=None):
    """Pure-JAX reference. If mxu_dtype is given, matmul inputs are cast to it
    (mirroring the kernel's bf16 MXU feed); all other math stays f32."""
    cast = (lambda a: a.astype(mxu_dtype)) if mxu_dtype is not None else (lambda a: a)
    b1 = jnp.reshape(b1, (1, -1))
    b2 = jnp.reshape(b2, (1, -1))
    b3 = jnp.reshape(b3, (1, -1))
    h = jnp.dot(cast(x), cast(w1), preferred_element_type=jnp.float32) + b1
    h = jnp.maximum(_layernorm_ref(h), 0.0)
    h = jnp.dot(cast(h), cast(w2), preferred_element_type=jnp.float32) + b2
    h = jnp.maximum(_layernorm_ref(h), 0.0)
    return jnp.dot(cast(h), cast(w3), preferred_element_type=jnp.float32) + b3


def init_linear(key, fan_in, fan_out):
    # Deterministic init mimicking torch.nn.Linear default (uniform +/- 1/sqrt(fan_in)).
    kw, kb = jax.random.split(key)
    bound = 1.0 / jnp.sqrt(jnp.float32(fan_in))
    w = jax.random.uniform(kw, (fan_in, fan_out), jnp.float32, -bound, bound)
    b = jax.random.uniform(kb, (1, fan_out), jnp.float32, -bound, bound)
    return w, b


if __name__ == "__main__":
    # Small shapes consistent with the module: in=32, hidden=32, out=16.
    # Batch 256 -> block_b=128 -> 2-step grid (exercises pipelining / megacore).
    B, F_IN, HID, F_OUT = 256, 32, 32, 16

    key = jax.random.PRNGKey(0)
    kx, k1, k2, k3 = jax.random.split(key, 4)

    x = jax.random.normal(kx, (B, F_IN), jnp.float32)
    w1, b1 = init_linear(k1, F_IN, HID)
    w2, b2 = init_linear(k2, HID, HID)
    w3, b3 = init_linear(k3, HID, F_OUT)

    out = mlp_pallas(x, w1, b1, w2, b2, w3, b3)
    out = jax.block_until_ready(out)
    assert out.shape == (B, F_OUT)
    assert out.dtype == x.dtype

    # Tight check vs a reference using the same bf16 MXU inputs / f32 accumulation.
    ref_matched = mlp_reference(x, w1, b1, w2, b2, w3, b3, mxu_dtype=jnp.bfloat16)
    assert jnp.allclose(out, ref_matched, atol=2e-4, rtol=2e-4), \
        "mismatch vs matched-precision reference"

    # Loose check vs the pure-f32 reference (only bf16 quantization of matmul inputs differs).
    ref_f32 = mlp_reference(x, w1, b1, w2, b2, w3, b3)
    assert jnp.allclose(out, ref_f32, atol=5e-2, rtol=5e-2), "mismatch vs f32 reference"

    print("KERNEL_OK")
</pallas_src>

<mosaic_0001>
module attributes {stable_mosaic.version = 11 : i64} {
  func.func @mlp_kernel(%arg0: i32, %arg1: memref<128x32xf32, #tpu.memory_space<vmem>>, %arg2: memref<32x128xbf16, #tpu.memory_space<vmem>>, %arg3: memref<1x128xf32, #tpu.memory_space<vmem>>, %arg4: memref<128x128xbf16, #tpu.memory_space<vmem>>, %arg5: memref<1x128xf32, #tpu.memory_space<vmem>>, %arg6: memref<128x16xbf16, #tpu.memory_space<vmem>>, %arg7: memref<1x16xf32, #tpu.memory_space<vmem>>, %arg8: memref<128x16xf32, #tpu.memory_space<vmem>>) attributes {dimension_semantics = [#tpu.dimension_semantics<parallel>], iteration_bounds = array<i64: 2>, scalar_prefetch = 0 : i64, scratch_operands = 0 : i64, tpu.core_type = #tpu.core_type<tc>, window_params = [{transform_indices = @transform_0, window_bounds = array<i64: 128, 32>}, {pipeline_mode = #tpu.pipeline_mode<synchronous>, transform_indices = @transform_1, window_bounds = array<i64: 32, 128>}, {pipeline_mode = #tpu.pipeline_mode<synchronous>, transform_indices = @transform_2, window_bounds = array<i64: 1, 128>}, {pipeline_mode = #tpu.pipeline_mode<synchronous>, transform_indices = @transform_3, window_bounds = array<i64: 128, 128>}, {pipeline_mode = #tpu.pipeline_mode<synchronous>, transform_indices = @transform_4, window_bounds = array<i64: 1, 128>}, {pipeline_mode = #tpu.pipeline_mode<synchronous>, transform_indices = @transform_5, window_bounds = array<i64: 128, 16>}, {pipeline_mode = #tpu.pipeline_mode<synchronous>, transform_indices = @transform_6, window_bounds = array<i64: 1, 16>}, {transform_indices = @transform_7, window_bounds = array<i64: 128, 16>}]} {
    %c0 = arith.constant 0 : index
    %c0_0 = arith.constant 0 : index
    %0 = vector.load %arg1[%c0, %c0_0] : memref<128x32xf32, #tpu.memory_space<vmem>>, vector<128x32xf32>
    %1 = arith.truncf %0 : vector<128x32xf32> to vector<128x32xbf16>
    %c0_1 = arith.constant 0 : index
    %c0_2 = arith.constant 0 : index
    %2 = vector.load %arg2[%c0_1, %c0_2] : memref<32x128xbf16, #tpu.memory_space<vmem>>, vector<32x128xbf16>
    %cst = arith.constant dense<0.000000e+00> : vector<128x128xf32>
    %3 = tpu.matmul %1, %2, %cst {dimension_numbers = #tpu.dot_dimension_numbers<[1], [0], [0], [1], [0, 0, 1, 1], [], []>} : vector<128x32xbf16>, vector<32x128xbf16>, vector<128x128xf32> -> vector<128x128xf32>
    %c0_3 = arith.constant 0 : index
    %c0_4 = arith.constant 0 : index
    %4 = vector.load %arg3[%c0_3, %c0_4] : memref<1x128xf32, #tpu.memory_space<vmem>>, vector<1x128xf32>
    %5 = vector.broadcast %4 : vector<1x128xf32> to vector<128x128xf32>
    %6 = arith.addf %3, %5 : vector<128x128xf32>
    %cst_5 = arith.constant dense<0.000000e+00> : vector<128xf32>
    %7 = vector.multi_reduction <add>, %6, %cst_5 [1] : vector<128x128xf32> to vector<128xf32>
    %8 = vector.shape_cast %7 : vector<128xf32> to vector<128x1xf32>
    %cst_6 = arith.constant 3.125000e-02 : f32
    %9 = vector.broadcast %cst_6 : f32 to vector<128x1xf32>
    %10 = arith.mulf %8, %9 : vector<128x1xf32>
    %11 = arith.mulf %6, %6 : vector<128x128xf32>
    %cst_7 = arith.constant dense<0.000000e+00> : vector<128xf32>
    %12 = vector.multi_reduction <add>, %11, %cst_7 [1] : vector<128x128xf32> to vector<128xf32>
    %13 = vector.shape_cast %12 : vector<128xf32> to vector<128x1xf32>
    %cst_8 = arith.constant 3.125000e-02 : f32
    %14 = vector.broadcast %cst_8 : f32 to vector<128x1xf32>
    %15 = arith.mulf %13, %14 : vector<128x1xf32>
    %16 = arith.mulf %10, %10 : vector<128x1xf32>
    %17 = arith.subf %15, %16 : vector<128x1xf32>
    %cst_9 = arith.constant 0.000000e+00 : f32
    %18 = vector.broadcast %cst_9 : f32 to vector<128x1xf32>
    %19 = arith.maximumf %17, %18 : vector<128x1xf32>
    %20 = vector.broadcast %10 : vector<128x1xf32> to vector<128x128xf32>
    %21 = arith.subf %6, %20 : vector<128x128xf32>
    %cst_10 = arith.constant 9.99999993E-9 : f32
    %22 = vector.broadcast %cst_10 : f32 to vector<128x1xf32>
    %23 = arith.addf %19, %22 : vector<128x1xf32>
    %24 = math.rsqrt %23 : vector<128x1xf32>
    %25 = vector.broadcast %24 : vector<128x1xf32> to vector<128x128xf32>
    %26 = arith.mulf %21, %25 : vector<128x128xf32>
    %cst_11 = arith.constant 0.000000e+00 : f32
    %27 = vector.broadcast %cst_11 : f32 to vector<128x128xf32>
    %28 = arith.maximumf %26, %27 : vector<128x128xf32>
    %29 = arith.truncf %28 : vector<128x128xf32> to vector<128x128xbf16>
    %c0_12 = arith.constant 0 : index
    %c0_13 = arith.constant 0 : index
    %30 = vector.load %arg4[%c0_12, %c0_13] : memref<128x128xbf16, #tpu.memory_space<vmem>>, vector<128x128xbf16>
    %cst_14 = arith.constant dense<0.000000e+00> : vector<128x128xf32>
    %31 = tpu.matmul %29, %30, %cst_14 {dimension_numbers = #tpu.dot_dimension_numbers<[1], [0], [0], [1], [0, 0, 1, 1], [], []>} : vector<128x128xbf16>, vector<128x128xbf16>, vector<128x128xf32> -> vector<128x128xf32>
    %c0_15 = arith.constant 0 : index
    %c0_16 = arith.constant 0 : index
    %32 = vector.load %arg5[%c0_15, %c0_16] : memref<1x128xf32, #tpu.memory_space<vmem>>, vector<1x128xf32>
    %33 = vector.broadcast %32 : vector<1x128xf32> to vector<128x128xf32>
    %34 = arith.addf %31, %33 : vector<128x128xf32>
    %cst_17 = arith.constant dense<0.000000e+00> : vector<128xf32>
    %35 = vector.multi_reduction <add>, %34, %cst_17 [1] : vector<128x128xf32> to vector<128xf32>
    %36 = vector.shape_cast %35 : vector<128xf32> to vector<128x1xf32>
    %cst_18 = arith.constant 3.125000e-02 : f32
    %37 = vector.broadcast %cst_18 : f32 to vector<128x1xf32>
    %38 = arith.mulf %36, %37 : vector<128x1xf32>
    %39 = arith.mulf %34, %34 : vector<128x128xf32>
    %cst_19 = arith.constant dense<0.000000e+00> : vector<128xf32>
    %40 = vector.multi_reduction <add>, %39, %cst_19 [1] : vector<128x128xf32> to vector<128xf32>
    %41 = vector.shape_cast %40 : vector<128xf32> to vector<128x1xf32>
    %cst_20 = arith.constant 3.125000e-02 : f32
    %42 = vector.broadcast %cst_20 : f32 to vector<128x1xf32>
    %43 = arith.mulf %41, %42 : vector<128x1xf32>
    %44 = arith.mulf %38, %38 : vector<128x1xf32>
    %45 = arith.subf %43, %44 : vector<128x1xf32>
    %cst_21 = arith.constant 0.000000e+00 : f32
    %46 = vector.broadcast %cst_21 : f32 to vector<128x1xf32>
    %47 = arith.maximumf %45, %46 : vector<128x1xf32>
    %48 = vector.broadcast %38 : vector<128x1xf32> to vector<128x128xf32>
    %49 = arith.subf %34, %48 : vector<128x128xf32>
    %cst_22 = arith.constant 9.99999993E-9 : f32
    %50 = vector.broadcast %cst_22 : f32 to vector<128x1xf32>
    %51 = arith.addf %47, %50 : vector<128x1xf32>
    %52 = math.rsqrt %51 : vector<128x1xf32>
    %53 = vector.broadcast %52 : vector<128x1xf32> to vector<128x128xf32>
    %54 = arith.mulf %49, %53 : vector<128x128xf32>
    %cst_23 = arith.constant 0.000000e+00 : f32
    %55 = vector.broadcast %cst_23 : f32 to vector<128x128xf32>
    %56 = arith.maximumf %54, %55 : vector<128x128xf32>
    %57 = arith.truncf %56 : vector<128x128xf32> to vector<128x128xbf16>
    %c0_24 = arith.constant 0 : index
    %c0_25 = arith.constant 0 : index
    %58 = vector.load %arg6[%c0_24, %c0_25] : memref<128x16xbf16, #tpu.memory_space<vmem>>, vector<128x16xbf16>
    %cst_26 = arith.constant dense<0.000000e+00> : vector<128x16xf32>
    %59 = tpu.matmul %57, %58, %cst_26 {dimension_numbers = #tpu.dot_dimension_numbers<[1], [0], [0], [1], [0, 0, 1, 1], [], []>} : vector<128x128xbf16>, vector<128x16xbf16>, vector<128x16xf32> -> vector<128x16xf32>
    %c0_27 = arith.constant 0 : index
    %c0_28 = arith.constant 0 : index
    %60 = vector.load %arg7[%c0_27, %c0_28] : memref<1x16xf32, #tpu.memory_space<vmem>>, vector<1x16xf32>
    %61 = vector.broadcast %60 : vector<1x16xf32> to vector<128x16xf32>
    %62 = arith.addf %59, %61 : vector<128x16xf32>
    %c0_29 = arith.constant 0 : index
    %c0_30 = arith.constant 0 : index
    %63 = vector.load %arg8[%c0_29, %c0_30] : memref<128x16xf32, #tpu.memory_space<vmem>>, vector<128x16xf32>
    tpu.vector_store %arg8[%c0_29, %c0_30], %62 {strides = array<i32>} : memref<128x16xf32, #tpu.memory_space<vmem>>, vector<128x16xf32>,
    return
  }
  func.func @transform_0(%arg0: i32) -> (i32, i32) {
    %c0_i32 = arith.constant 0 : i32
    %c0_i32_0 = arith.constant 0 : i32
    return %arg0, %c0_i32 : i32, i32
  }
  func.func @transform_1(%arg0: i32) -> (i32, i32) {
    %c0_i32 = arith.constant 0 : i32
    %c0_i32_0 = arith.constant 0 : i32
    %c0_i32_1 = arith.constant 0 : i32
    return %c0_i32, %c0_i32_0 : i32, i32
  }
  func.func @transform_2(%arg0: i32) -> (i32, i32) {
    %c0_i32 = arith.constant 0 : i32
    %c0_i32_0 = arith.constant 0 : i32
    %c0_i32_1 = arith.constant 0 : i32
    return %c0_i32, %c0_i32_0 : i32, i32
  }
  func.func @transform_3(%arg0: i32) -> (i32, i32) {
    %c0_i32 = arith.constant 0 : i32
    %c0_i32_0 = arith.constant 0 : i32
    %c0_i32_1 = arith.constant 0 : i32
    return %c0_i32, %c0_i32_0 : i32, i32
  }
  func.func @transform_4(%arg0: i32) -> (i32, i32) {
    %c0_i32 = arith.constant 0 : i32
    %c0_i32_0 = arith.constant 0 : i32
    %c0_i32_1 = arith.constant 0 : i32
    return %c0_i32, %c0_i32_0 : i32, i32
  }
  func.func @transform_5(%arg0: i32) -> (i32, i32) {
    %c0_i32 = arith.constant 0 : i32
    %c0_i32_0 = arith.constant 0 : i32
    %c0_i32_1 = arith.constant 0 : i32
    return %c0_i32, %c0_i32_0 : i32, i32
  }
  func.func @transform_6(%arg0: i32) -> (i32, i32) {
    %c0_i32 = arith.constant 0 : i32
    %c0_i32_0 = arith.constant 0 : i32
    %c0_i32_1 = arith.constant 0 : i32
    return %c0_i32, %c0_i32_0 : i32, i32
  }
  func.func @transform_7(%arg0: i32) -> (i32, i32) {
    %c0_i32 = arith.constant 0 : i32
    %c0_i32_0 = arith.constant 0 : i32
    return %arg0, %c0_i32 : i32, i32
  }
}

</mosaic_0001>

<bundles_post_ra>
// kernel: mlp_pallas_prepared.1
= control target key start
LH: loop header
LB: loop body
LE: loop exit
PB: predicated region body
PF: predicated region fallthrough
CT: control target
= control target key end

     0   :  { %s1661_s24 = smov 0   ;;  %s2151_s0 = inlined_call_operand.vmem [shape: f32[256,32], index: 0, kind: input, shape index: {}]   ;;  %s2152_s1 = inlined_call_operand.vmem [shape: bf16[32,128], index: 1, kind: input, shape index: {}]   ;;  %s2153_s2 = inlined_call_operand.vmem [shape: f32[1,128], index: 2, kind: input, shape index: {}]   ;;  %s2154_s3 = inlined_call_operand.vmem [shape: bf16[128,128], index: 3, kind: input, shape index: {}]   ;;  %s2155_s4 = inlined_call_operand.vmem [shape: f32[1,128], index: 4, kind: input, shape index: {}]   ;;  %s2156_s5 = inlined_call_operand.vmem [shape: bf16[128,16], index: 5, kind: input, shape index: {}]   ;;  %s2157_s6 = inlined_call_operand.vmem [shape: f32[1,16], index: 6, kind: input, shape index: {}]   ;;  %s2158_s7 = inlined_call_operand.vmem [shape: f32[256,16], index: 7, kind: output, shape index: {}]  }
   0x1 LB: > { %s1357_s25 = sadd.s32 4294967295, %s1619_s24   ;;  %p1361_p0 = scmp.ge.s32.totalorder %s1619_s24, 1  ;;  %s1619_s24 = sphi %s1661_s24, %s17_s24  }
   0x2   : > { %p238_p1 = scmp.lt.s32.totalorder %s1619_s24, 3 }
   0x4   : > { %p239_p2 = pnand %p1361_p0, %p238_p1 }
   0x5   : > { %v1531_v0 = vld [vmem:[%s2152_s1] sm:$0xff] (!%p239_p2)   ;;  %s1362_s28 = sshll.u32 (!%p239_p2), %s1357_s25, 4  ;;  %v1532_v1 = vld [vmem:[%s2152_s1 + $0x8] sm:$0xff] (!%p239_p2)   ;;  %vm330_vm0 = vcmask (!%p239_p2), 261120   ;;  %v1535_v61 = vld [vmem:[%s2154_s3 + $0x10] sm:$0xff] (!%p239_p2)   ;;  %vm1284_vm1 = vcmask (!%p239_p2), 130048  }
   0x6   : > { %242 = sbr.rel (%p239_p2) target bundleno = 1076 (0x434), region = 48  ;;  %p271_p3 = scmp.lt.s32.totalorder (!%p239_p2), %s1362_s28, 31  ;;  %1439 = vmatprep.subr.bf16.mxu0 (!%p239_p2), %v1531_v0  ;;  %v1712_v26 = vld [vmem:[%s2153_s2] ss:$0 sm:$0xff] (!%p239_p2)  ;;  %v1534_v57 = vld [vmem:[%s2154_s3 + $0x8] sm:$0xff] (!%p239_p2)  }
   0x7   : > { %1440 = vmatpush3.bf16.msra.mxu0 (!%p239_p2), %v1531_v0  ;;  %v1533_v51 = vld [vmem:[%s2154_s3] sm:$0xff] (!%p239_p2)   ;;  %v1536_v0 = vld [vmem:[%s2154_s3 + $0x18] sm:$0xff] (!%p239_p2)  }
   0x8   : > { %1441 = vmatprep.subr.bf16.mxu0 (!%p239_p2), %v1532_v1  ;;  %1459 = vmatprep.subr.bf16.mxu1 (!%p239_p2), %v1533_v51 }
   0x9   : > { %1460 = vmatpush3.bf16.msra.mxu1 (!%p239_p2), %v1533_v51 }
   0xa   : > { %1461 = vmatprep.subr.bf16.mxu1 (!%p239_p2), %v1534_v57 }
   0xb   : > { %1442 = vmatpush3.bf16.msra.mxu0 (!%p239_p2), %v1532_v1 }
   0xd   : > { %s2160_s28 = smov (!%p271_p3, %s1362_s28), 31  ;;  %1462 = vmatpush3.bf16.msra.mxu1 %v1534_v57 }
   0xe   : > { %s1363_s8 = sshll.u32 %s2160_s28, 3  ;;  %1463 = vmatprep.subr.bf16.mxu1 %v1535_v61 }
   0xf   : > { %s1683_s11 = scalar_lea.vmem %s2151_s0, %s1363_s8  ;;  %s2114_s12 = scalar_lea.vmem %s2158_s7, %s1363_s8 }
  0x10   : > { %v283_v2 = vld [vmem:[%s1683_s11] sm:$0xff]  ;;  %v284_v3 = vld [vmem:[%s1683_s11 + $0x8] sm:$0xff]  ;;  %v285_v4 = vld [vmem:[%s1683_s11 + $0x10] sm:$0xff] }
  0x11   : > { %v299_v5 = vpack.c.bf16 %v284_v3, %v283_v2  ;;  %v286_v6 = vld [vmem:[%s1683_s11 + $0x18] sm:$0xff]  ;;  %v287_v7 = vld [vmem:[%s1683_s11 + $0x20] sm:$0xff]  ;;  %v288_v8 = vld [vmem:[%s1683_s11 + $0x28] sm:$0xff]  ;;  %1464 = vmatpush3.bf16.msra.mxu1 %v1535_v61 }
  0x12   : > { %v300_v9 = vpack.c.bf16 %v286_v6, %v285_v4  ;;  %v301_v10 = vpack.c.bf16 %v288_v8, %v287_v7  ;;  %v289_v11 = vld [vmem:[%s1683_s11 + $0x30] sm:$0xff]  ;;  %v290_v12 = vld [vmem:[%s1683_s11 + $0x38] sm:$0xff]  ;;  %v291_v13 = vld [vmem:[%s1683_s11 + $0x40] sm:$0xff]  ;;  %1465 = vmatprep.subr.bf16.mxu1 %v1536_v0 }
  0x13   : > { %1443 = vmatprep.mubr.msk.bf16.mxu0 %vm330_vm0, %v299_v5  ;;  %v292_v14 = vld [vmem:[%s1683_s11 + $0x48] sm:$0xff]  ;;  %v302_v15 = vpack.c.bf16 %v290_v12, %v289_v11  ;;  %v293_v17 = vld [vmem:[%s1683_s11 + $0x50] sm:$0xff]  ;;  %v294_v18 = vld [vmem:[%s1683_s11 + $0x58] sm:$0xff] }
  0x14   : > { %1444 = vmatmul.mubr.msk.bf16.vlgmr.msra.gmra.mrb[0].mxu0 %vm330_vm0, %v300_v9  ;;  %v303_v16 = vpack.c.bf16 %v292_v14, %v291_v13  ;;  %v295_v19 = vld [vmem:[%s1683_s11 + $0x60] sm:$0xff]  ;;  %v296_v20 = vld [vmem:[%s1683_s11 + $0x68] sm:$0xff]  ;;  %v304_v21 = vpack.c.bf16 %v294_v18, %v293_v17  ;;  %v297_v23 = vld [vmem:[%s1683_s11 + $0x70] sm:$0xff] }
  0x15   : > { %1447 = vmatprep.mubr.msk.bf16.mxu0 %vm330_vm0, %v301_v10  ;;  %v305_v22 = vpack.c.bf16 %v296_v20, %v295_v19  ;;  %v298_v24 = vld [vmem:[%s1683_s11 + $0x78] sm:$0xff]  ;;  %1466 = vmatpush3.bf16.msra.mxu1 %v1536_v0  ;;  %v1537_v3 = vld [vmem:[%s2154_s3 + $0x20] sm:$0xff]   ;;  %v1538_v6 = vld [vmem:[%s2154_s3 + $0x28] sm:$0xff]  }
  0x16   : > { %v306_v25 = vpack.c.bf16 %v298_v24, %v297_v23  ;;  %1467 = vmatprep.subr.bf16.mxu1 %v1537_v3  ;;  %v1539_v9 = vld [vmem:[%s2154_s3 + $0x30] sm:$0xff]   ;;  %v1540_v12 = vld [vmem:[%s2154_s3 + $0x38] sm:$0xff]  }
  0x19   : > { %1468 = vmatpush3.bf16.msra.mxu1 %v1537_v3 }
  0x1a   : > { %1469 = vmatprep.subr.bf16.mxu1 %v1538_v6 }
  0x1c   : > { %1448 = vmatmul.mubr.msk.bf16.gmra.mrb[4].mxu0 %vm330_vm0, %v302_v15 }
  0x1d   : > { %1451 = vmatprep.mubr.msk.bf16.mxu0 %vm330_vm0, %v303_v16  ;;  %1470 = vmatpush3.bf16.msra.mxu1 %v1538_v6 }
  0x1e   : > { %1471 = vmatprep.subr.bf16.mxu1 %v1539_v9 }
  0x21   : > { %1472 = vmatpush3.bf16.msra.mxu1 %v1539_v9 }
  0x22   : > { %1473 = vmatprep.subr.bf16.mxu1 %v1540_v12 }
  0x24   : > { %1452 = vmatmul.mubr.msk.bf16.gmra.mrb[8].mxu0 %vm330_vm0, %v304_v21 }
  0x25   : > { %1455 = vmatprep.mubr.msk.bf16.mxu0 %vm330_vm0, %v305_v22  ;;  %1474 = vmatpush3.bf16.msra.mxu1 %v1540_v12 }
  0x2c   : > { %1456 = vmatmul.mubr.msk.bf16.gmra.mrb[12].mxu0 %vm330_vm0, %v306_v25 }
  0xe7   : > { %v1445_v27 = vpop.f32.mrb[0].mxu0 }
  0xe8   : > { %v1715_v28 = vadd.f32 %v1445_v27, %v1712_v26  ;;  %v389_v29 = vpop.f32.mrb[1].mxu0 }
  0xe9   : > { %v1718_v30 = vadd.f32 %v1712_v26, %v389_v29  ;;  %v1446_v31 = vpop.f32.mrb[2].mxu0 }
  0xea   : > { %456 = vadd.xlane.f32.xlu1 %v1715_v28  ;;  %v392_v32 = vpop.f32.mrb[3].mxu0  ;;  %v1723_v33 = vadd.f32 %v1446_v31, %v1712_v26  ;;  %v502_v34 = vmul.f32 %v1715_v28, %v1715_v28 }
  0xeb   : > { %452 = vadd.xlane.f32.xlu0 %v1718_v30  ;;  %v1729_v36 = vadd.f32 %v1712_v26, %v392_v32  ;;  %v500_v42 = vmul.f32 %v1718_v30, %v1718_v30 }
  0xec   : > { %v503_v37 = vmul.f32 %v1723_v33, %v1723_v33 }
  0xed   : > { %v501_v41 = vmul.f32 %v1729_v36, %v1729_v36 }
  0xee   : > { %458 = vadd.xlane.f32.xlu1 %v1723_v33 }
  0xef   : > { %520 = vadd.xlane.f32.xlu0 %v502_v34  ;;  %v1449_v35 = vpop.f32.mrb[4].mxu0 }
  0xf0   : > { %v405_v38 = vpop.f32.mrb[5].mxu0  ;;  %v1742_v46 = vadd.f32 %v1449_v35, %v1712_v26 }
  0xf1   : > { %v1450_v39 = vpop.f32.mrb[6].mxu0  ;;  %v1750_v50 = vadd.f32 %v1712_v26, %v405_v38 }
  0xf2   : > { %522 = vadd.xlane.f32.xlu1 %v503_v37  ;;  %v408_v40 = vpop.f32.mrb[7].mxu0  ;;  %v1739_v43 = vadd.f32 %v1450_v39, %v1712_v26  ;;  %v506_v55 = vmul.f32 %v1742_v46, %v1742_v46 }
  0xf3   : > { %454 = vadd.xlane.f32.xlu0 %v1729_v36  ;;  %v1747_v49 = vadd.f32 %v1712_v26, %v408_v40  ;;  %v504_v60 = vmul.f32 %v1750_v50, %v1750_v50 }
  0xf4   : > { %v507_v53 = vmul.f32 %v1739_v43, %v1739_v43 }
  0xf5   : > { %v505_v59 = vmul.f32 %v1747_v49, %v1747_v49 }
  0xf6   : > { %518 = vadd.xlane.f32.xlu1 %v501_v41 }
  0xf7   : > { %516 = vadd.xlane.f32.xlu0 %v500_v42  ;;  %v1453_v44 = vpop.f32.mrb[8].mxu0 }
  0xf8   : > { %v421_v45 = vpop.f32.mrb[9].mxu0  ;;  %v1775_v63 = vadd.f32 %v1453_v44, %v1712_v26 }
  0xf9   : > { %v1454_v47 = vpop.f32.mrb[10].mxu0  ;;  %v1786_v2 = vadd.f32 %v1712_v26, %v421_v45 }
  0xfa   : > { %466 = vadd.xlane.f32.xlu1 %v1739_v43  ;;  %v424_v48 = vpop.f32.mrb[11].mxu0  ;;  %v1772_v62 = vadd.f32 %v1454_v47, %v1712_v26  ;;  %v510_v5 = vmul.f32 %v1775_v63, %v1775_v63 }
  0xfb   : > { %464 = vadd.xlane.f32.xlu0 %v1742_v46  ;;  %v1783_v1 = vadd.f32 %v1712_v26, %v424_v48  ;;  %v508_v8 = vmul.f32 %v1786_v2, %v1786_v2 }
  0xfc   : > { %v511_v4 = vmul.f32 %v1772_v62, %v1772_v62 }
  0xfd   : > { %v509_v7 = vmul.f32 %v1783_v1, %v1783_v1 }
  0xfe   : > { %462 = vadd.xlane.f32.xlu1 %v1747_v49 }
  0xff   : > { %460 = vadd.xlane.f32.xlu0 %v1750_v50  ;;  %v1457_v52 = vpop.f32.mrb[12].mxu0 }
 0x100   : > { %v437_v54 = vpop.f32.mrb[13].mxu0  ;;  %v1811_v11 = vadd.f32 %v1457_v52, %v1712_v26 }
 0x101   : > { %v1458_v56 = vpop.f32.mrb[14].mxu0  ;;  %v1822_v14 = vadd.f32 %v1712_v26, %v437_v54 }
 0x102   : > { %530 = vadd.xlane.f32.xlu1 %v507_v53  ;;  %v440_v58 = vpop.f32.mrb[15].mxu0  ;;  %v1808_v10 = vadd.f32 %v1458_v56, %v1712_v26  ;;  %v514_v18 = vmul.f32 %v1811_v11, %v1811_v11 }
 0x103   : > { %528 = vadd.xlane.f32.xlu0 %v506_v55  ;;  %v1819_v13 = vadd.f32 %v1712_v26, %v440_v58  ;;  %v512_v16 = vmul.f32 %v1822_v14, %v1822_v14 }
 0x104   : > { %v515_v17 = vmul.f32 %v1808_v10, %v1808_v10 }
 0x105   : > { %v513_v15 = vmul.f32 %v1819_v13, %v1819_v13 }
 0x106   : > { %526 = vadd.xlane.f32.xlu1 %v505_v59 }
 0x107   : > { %524 = vadd.xlane.f32.xlu0 %v504_v60 }
 0x10a   : > { %474 = vadd.xlane.f32.xlu1 %v1772_v62 }
 0x10b   : > { %472 = vadd.xlane.f32.xlu0 %v1775_v63 }
 0x10e   : > { %470 = vadd.xlane.f32.xlu1 %v1783_v1 }
 0x10f   : > { %468 = vadd.xlane.f32.xlu0 %v1786_v2 }
 0x112   : > { %538 = vadd.xlane.f32.xlu1 %v511_v4 }
 0x113   : > { %536 = vadd.xlane.f32.xlu0 %v510_v5 }
 0x116   : > { %534 = vadd.xlane.f32.xlu1 %v509_v7 }
 0x117   : > { %532 = vadd.xlane.f32.xlu0 %v508_v8 }
 0x11a   : > { %482 = vadd.xlane.f32.xlu1 %v1808_v10 }
 0x11b   : > { %480 = vadd.xlane.f32.xlu0 %v1811_v11 }
 0x11e   : > { %478 = vadd.xlane.f32.xlu1 %v1819_v13 }
 0x11f   : > { %476 = vadd.xlane.f32.xlu0 %v1822_v14 }
 0x122   : > { %542 = vadd.xlane.f32.xlu1 %v513_v15 }
 0x123   : > { %540 = vadd.xlane.f32.xlu0 %v512_v16 }
 0x126   : > { %546 = vadd.xlane.f32.xlu1 %v515_v17 }
 0x127   : > { %544 = vadd.xlane.f32.xlu0 %v514_v18 }
 0x177   : > { %v457_v19 = vpop.xlane.xlu1 %456 }
 0x178   : > { %v453_v20 = vpop.xlane.xlu0 %452  ;;  %v1834_v21 = vmul.f32 0.03125, %v457_v19 }
 0x179   : > { %v1838_v35 = vmul.f32 0.03125, %v453_v20 }
 0x17a   : > { %v566_v25 = vmul.f32 %v1834_v21, %v1834_v21  ;;  %v614_v19 = vsub.f32 %v1715_v28, %v1834_v21 }
 0x17b   : > { %v459_v22 = vpop.xlane.xlu1 %458  ;;  %v564_v47 = vmul.f32 %v1838_v35, %v1838_v35 }
 0x17c   : > { %v487_v23 = vmul.f32 0.03125, %v459_v22  ;;  %v521_v24 = vpop.xlane.xlu0 %520 }
 0x17d   : > { %v550_v26 = vmul.f32 0.03125, %v521_v24 }
 0x17e   : > { %v567_v31 = vmul.f32 %v487_v23, %v487_v23  ;;  %v615_v20 = vsub.f32 %v1723_v33, %v487_v23  ;;  %v612_v33 = vsub.f32 %v1718_v30, %v1838_v35 }
 0x17f   : > { %v582_v27 = vsub.f32 %v550_v26, %v566_v25  ;;  %v523_v29 = vpop.xlane.xlu1 %522 }
 0x180   : > { %v551_v32 = vmul.f32 0.03125, %v523_v29  ;;  %v455_v34 = vpop.xlane.xlu0 %454 }
 0x181   : > { %v485_v37 = vmul.f32 0.03125, %v455_v34  ;;  %v598_v38 = vmax.f32 %v582_v27, 0.0 }
 0x182   : > { %v583_v39 = vsub.f32 %v551_v32, %v567_v31 }
 0x183   : > { %v565_v40 = vmul.f32 %v485_v37, %v485_v37  ;;  %v519_v41 = vpop.xlane.xlu1 %518  ;;  %v630_v51 = vadd.f32 1e-08, %v598_v38  ;;  %v613_v26 = vsub.f32 %v1729_v36, %v485_v37 }
 0x184   : > { %v599_v42 = vmax.f32 %v583_v39, 0.0  ;;  %v549_v44 = vmul.f32 0.03125, %v519_v41  ;;  %v517_v45 = vpop.xlane.xlu0 %516 }
 0x185   : > { %v548_v48 = vmul.f32 0.03125, %v517_v45 }
 0x186   : > { %v631_v52 = vadd.f32 1e-08, %v599_v42  ;;  %v581_v53 = vsub.f32 %v549_v44, %v565_v40 }
 0x187   : > { %v580_v54 = vsub.f32 %v548_v48, %v564_v47  ;;  %v467_v55 = vpop.xlane.xlu1 %466 }
 0x188   : > { %1549 = vrsqrt.f32 %v631_v52  ;;  %v597_v56 = vmax.f32 %v581_v53, 0.0  ;;  %v465_v57 = vpop.xlane.xlu0 %464  ;;  %v1842_v0 = vmul.f32 0.03125, %v467_v55 }
 0x189   : > { %v596_v58 = vmax.f32 %v580_v54, 0.0  ;;  %1551 = vrsqrt.f32 %v630_v51  ;;  %v1844_v4 = vmul.f32 0.03125, %v465_v57 }
 0x18a   : > { %v629_v59 = vadd.f32 1e-08, %v597_v56  ;;  %v571_v6 = vmul.f32 %v1842_v0, %v1842_v0 }
 0x18b   : > { %v628_v60 = vadd.f32 1e-08, %v596_v58  ;;  %v463_v61 = vpop.xlane.xlu1 %462  ;;  %v570_v12 = vmul.f32 %v1844_v4, %v1844_v4 }
 0x18c   : > { %1553 = vrsqrt.f32 %v629_v59  ;;  %v461_v3 = vpop.xlane.xlu0 %460  ;;  %v1848_v7 = vmul.f32 0.03125, %v463_v61 }
 0x18d   : > { %1555 = vrsqrt.f32 %v628_v60  ;;  %v1852_v15 = vmul.f32 0.03125, %v461_v3 }
 0x18e   : > { %v569_v27 = vmul.f32 %v1848_v7, %v1848_v7 }
 0x18f   : > { %v531_v5 = vpop.xlane.xlu1 %530  ;;  %v568_v34 = vmul.f32 %v1852_v15, %v1852_v15 }
 0x190   : > { %v555_v8 = vmul.f32 0.03125, %v531_v5  ;;  %v529_v9 = vpop.xlane.xlu0 %528 }
 0x191   : > { %v554_v16 = vmul.f32 0.03125, %v529_v9 }
 0x192   : > { %v1550_v17 = vpop.eup %1549  ;;  %v587_v18 = vsub.f32 %v555_v8, %v571_v6 }
 0x193   : > { %v586_v22 = vsub.f32 %v554_v16, %v570_v12  ;;  %v527_v24 = vpop.xlane.xlu1 %526  ;;  %v1552_v25 = vpop.eup %1551  ;;  %v663_v40 = vmul.f32 %v1550_v17, %v615_v20  ;;  %v619_v20 = vsub.f32 %v1739_v43, %v1842_v0 }
 0x194   : > { %v603_v29 = vmax.f32 %v587_v18, 0.0  ;;  %v553_v31 = vmul.f32 0.03125, %v527_v24  ;;  %v525_v32 = vpop.xlane.xlu0 %524  ;;  %v662_v45 = vmul.f32 %v1552_v25, %v614_v19  ;;  %v618_v25 = vsub.f32 %v1742_v46, %v1844_v4 }
 0x195   : > { %v602_v38 = vmax.f32 %v586_v22, 0.0  ;;  %v552_v39 = vmul.f32 0.03125, %v525_v32  ;;  %v679_v54 = vmax.f32 %v663_v40, 0.0  ;;  %v616_v46 = vsub.f32 %v1750_v50, %v1852_v15 }
 0x196   : > { %v1554_v28 = vpop.eup %1553  ;;  %v635_v21 = vadd.f32 1e-08, %v603_v29  ;;  %v585_v23 = vsub.f32 %v553_v31, %v569_v27  ;;  %v678_v35 = vmax.f32 %v662_v45, 0.0 }
 0x197   : > { %v1556_v41 = vpop.eup %1555  ;;  %v634_v36 = vadd.f32 1e-08, %v602_v38  ;;  %v584_v37 = vsub.f32 %v552_v39, %v568_v34  ;;  %v475_v42 = vpop.xlane.xlu1 %474  ;;  %v661_v44 = vmul.f32 %v1554_v28, %v613_v26  ;;  %v617_v26 = vsub.f32 %v1747_v49, %v1848_v7 }
 0x198   : > { %1557 = vrsqrt.f32 %v635_v21  ;;  %v601_v47 = vmax.f32 %v585_v23, 0.0  ;;  %v473_v48 = vpop.xlane.xlu0 %472  ;;  %v660_v51 = vmul.f32 %v1556_v41, %v612_v33  ;;  %v1864_v58 = vmul.f32 0.03125, %v475_v42 }
 0x199   : > { %1559 = vrsqrt.f32 %v634_v36  ;;  %v600_v52 = vmax.f32 %v584_v37, 0.0  ;;  %v677_v53 = vmax.f32 %v661_v44, 0.0  ;;  %v1866_v61 = vmul.f32 0.03125, %v473_v48 }
 0x19a   : > { %v633_v55 = vadd.f32 1e-08, %v601_v47  ;;  %v676_v56 = vmax.f32 %v660_v51, 0.0  ;;  %v693_v3 = vpack.c.bf16 %v679_v54, %v678_v35  ;;  %v575_v6 = vmul.f32 %v1864_v58, %v1864_v58 }
 0x19b   : > { %v632_v57 = vadd.f32 1e-08, %v600_v52  ;;  %v471_v30 = vpop.xlane.xlu1 %470  ;;  %v574_v16 = vmul.f32 %v1866_v61, %v1866_v61 }
 0x19c   : > { %1561 = vrsqrt.f32 %v633_v55  ;;  %v469_v59 = vpop.xlane.xlu0 %468  ;;  %v692_v60 = vpack.c.bf16 %v677_v53, %v676_v56  ;;  %v1870_v8 = vmul.f32 0.03125, %v471_v30 }
 0x19d   : > { %1563 = vrsqrt.f32 %v632_v57  ;;  %v1874_v17 = vmul.f32 0.03125, %v469_v59 }
 0x19e   : > { %1475 = vmatprep.mubr.bf16.mxu1 %v692_v60  ;;  %v573_v31 = vmul.f32 %v1870_v8, %v1870_v8 }
 0x19f   : > { %v539_v5 = vpop.xlane.xlu1 %538  ;;  %1476 = vmatmul.mubr.bf16.vlgmr.msra.gmra.mrb[0].mxu1 %v693_v3  ;;  %v572_v43 = vmul.f32 %v1874_v17, %v1874_v17 }
 0x1a0   : > { %v559_v9 = vmul.f32 0.03125, %v539_v5  ;;  %v537_v12 = vpop.xlane.xlu0 %536 }
 0x1a1   : > { %v558_v18 = vmul.f32 0.03125, %v537_v12 }
 0x1a2   : > { %v1558_v19 = vpop.eup %1557  ;;  %v591_v22 = vsub.f32 %v559_v9, %v575_v6 }
 0x1a3   : > { %v1560_v24 = vpop.eup %1559  ;;  %v590_v27 = vsub.f32 %v558_v18, %v574_v16  ;;  %v535_v29 = vpop.xlane.xlu1 %534  ;;  %v667_v39 = vmul.f32 %v1558_v19, %v619_v20  ;;  %v623_v18 = vsub.f32 %v1772_v62, %v1864_v58  ;;  %v620_v58 = vsub.f32 %v1786_v2, %v1874_v17 }
 0x1a4   : > { %v607_v32 = vmax.f32 %v591_v22, 0.0  ;;  %v557_v34 = vmul.f32 0.03125, %v535_v29  ;;  %v533_v38 = vpop.xlane.xlu0 %532  ;;  %v666_v28 = vmul.f32 %v1560_v24, %v618_v25  ;;  %v622_v22 = vsub.f32 %v1775_v63, %v1866_v61 }
 0x1a5   : > { %v606_v0 = vmax.f32 %v590_v27, 0.0  ;;  %v556_v40 = vmul.f32 0.03125, %v533_v38  ;;  %v683_v45 = vmax.f32 %v667_v39, 0.0  ;;  %v621_v24 = vsub.f32 %v1783_v1, %v1870_v8 }
 0x1a6   : > { %v1562_v33 = vpop.eup %1561  ;;  %v639_v49 = vadd.f32 1e-08, %v607_v32  ;;  %v589_v4 = vsub.f32 %v557_v34, %v573_v31  ;;  %v682_v51 = vmax.f32 %v666_v28, 0.0 }
 0x1a7   : > { %v1564_v7 = vpop.eup %1563  ;;  %v638_v21 = vadd.f32 1e-08, %v606_v0  ;;  %v588_v23 = vsub.f32 %v556_v40, %v572_v43  ;;  %v483_v41 = vpop.xlane.xlu1 %482  ;;  %v665_v36 = vmul.f32 %v1562_v33, %v617_v26 }
 0x1a8   : > { %1565 = vrsqrt.f32 %v639_v49  ;;  %v605_v37 = vmax.f32 %v589_v4, 0.0  ;;  %v481_v42 = vpop.xlane.xlu0 %480  ;;  %v664_v44 = vmul.f32 %v1564_v7, %v616_v46  ;;  %v695_v30 = vpack.c.bf16 %v683_v45, %v682_v51 }
 0x1a9   : > { %1567 = vrsqrt.f32 %v638_v21  ;;  %v604_v47 = vmax.f32 %v588_v23, 0.0  ;;  %v681_v48 = vmax.f32 %v665_v36, 0.0  ;;  %v499_v59 = vmul.f32 0.03125, %v483_v41 }
 0x1aa   : > { %v637_v52 = vadd.f32 1e-08, %v605_v37  ;;  %v680_v53 = vmax.f32 %v664_v44, 0.0  ;;  %v498_v6 = vmul.f32 0.03125, %v481_v42 }
 0x1ab   : > { %v636_v54 = vadd.f32 1e-08, %v604_v47  ;;  %v479_v50 = vpop.xlane.xlu1 %478  ;;  %v579_v27 = vmul.f32 %v499_v59, %v499_v59  ;;  %v627_v51 = vsub.f32 %v1808_v10, %v499_v59 }
 0x1ac   : > { %1569 = vrsqrt.f32 %v637_v52  ;;  %v1888_v15 = vmul.f32 0.03125, %v479_v50  ;;  %v477_v55 = vpop.xlane.xlu0 %476  ;;  %v694_v56 = vpack.c.bf16 %v681_v48, %v680_v53  ;;  %v578_v38 = vmul.f32 %v498_v6, %v498_v6 }
 0x1ad   : > { %1571 = vrsqrt.f32 %v636_v54  ;;  %v496_v57 = vmul.f32 0.03125, %v477_v55  ;;  %v626_v54 = vsub.f32 %v1811_v11, %v498_v6 }
 0x1ae   : > { %1479 = vmatprep.mubr.bf16.mxu1 %v694_v56  ;;  %v577_v60 = vmul.f32 %v1888_v15, %v1888_v15  ;;  %v625_v17 = vsub.f32 %v1819_v13, %v1888_v15 }
 0x1af   : > { %v543_v35 = vpop.xlane.xlu1 %542  ;;  %1480 = vmatmul.mubr.bf16.gmra.mrb[4].mxu1 %v695_v30  ;;  %v576_v9 = vmul.f32 %v496_v57, %v496_v57  ;;  %v624_v44 = vsub.f32 %v1822_v14, %v496_v57  ;;  %v1908_v14 = vld [vmem:[%s2155_s4] ss:$0 sm:$0xff] }
 0x1b0   : > { %v561_v3 = vmul.f32 0.03125, %v543_v35  ;;  %v541_v5 = vpop.xlane.xlu0 %540 }
 0x1b1   : > { %v560_v12 = vmul.f32 0.03125, %v541_v5 }
 0x1b2   : > { %v1566_v16 = vpop.eup %1565  ;;  %v593_v19 = vsub.f32 %v561_v3, %v577_v60 }
 0x1b3   : > { %v1568_v20 = vpop.eup %1567  ;;  %v592_v25 = vsub.f32 %v560_v12, %v576_v9  ;;  %v547_v26 = vpop.xlane.xlu1 %546  ;;  %v671_v34 = vmul.f32 %v1566_v16, %v623_v18 }
 0x1b4   : > { %v609_v29 = vmax.f32 %v593_v19, 0.0  ;;  %v563_v31 = vmul.f32 0.03125, %v547_v26  ;;  %v545_v32 = vpop.xlane.xlu0 %544  ;;  %v670_v0 = vmul.f32 %v1568_v20, %v622_v22 }
 0x1b5   : > { %v608_v39 = vmax.f32 %v592_v25, 0.0  ;;  %v562_v43 = vmul.f32 0.03125, %v545_v32  ;;  %v687_v49 = vmax.f32 %v671_v34, 0.0  ;;  %v1541_v34 = vld [vmem:[%s2156_s5] sm:$0xff]  }
 0x1b6   : > { %v1570_v62 = vpop.eup %1569  ;;  %v641_v40 = vadd.f32 1e-08, %v609_v29  ;;  %v595_v63 = vsub.f32 %v563_v31, %v579_v27  ;;  %v686_v21 = vmax.f32 %v670_v0, 0.0  ;;  %1491 = vmatprep.subr.bf16.mxu0 %v1541_v34 }
 0x1b7   : > { %v1572_v61 = vpop.eup %1571  ;;  %v640_v28 = vadd.f32 1e-08, %v608_v39  ;;  %v594_v1 = vsub.f32 %v562_v43, %v578_v38  ;;  %v669_v8 = vmul.f32 %v1570_v62, %v621_v24  ;;  %1492 = vmatpush3.bf16.msra.mxu0 %v1541_v34  ;;  %v1542_v43 = vld [vmem:[%s2156_s5 + $0x8] sm:$0xff]  }
 0x1b8   : > { %1573 = vrsqrt.f32 %v641_v40  ;;  %v611_v33 = vmax.f32 %v595_v63, 0.0  ;;  %v668_v46 = vmul.f32 %v1572_v61, %v620_v58  ;;  %v697_v2 = vpack.c.bf16 %v687_v49, %v686_v21  ;;  %1493 = vmatprep.subr.bf16.mxu0 %v1542_v43  ;;  %v1543_v61 = vld [vmem:[%s2156_s5 + $0x10] sm:$0xff]  }
 0x1b9   : > { %1575 = vrsqrt.f32 %v640_v28  ;;  %v610_v4 = vmax.f32 %v594_v1, 0.0  ;;  %v685_v7 = vmax.f32 %v669_v8, 0.0 }
 0x1ba   : > { %v643_v23 = vadd.f32 1e-08, %v611_v33  ;;  %v684_v41 = vmax.f32 %v668_v46, 0.0  ;;  %v1544_v33 = vld [vmem:[%s2156_s5 + $0x18] sm:$0xff]  }
 0x1bb   : > { %v642_v36 = vadd.f32 1e-08, %v610_v4  ;;  %1494 = vmatpush3.bf16.msra.mxu0 %v1542_v43  ;;  %v1545_v4 = vld [vmem:[%s2156_s5 + $0x20] sm:$0xff]  }
 0x1bc   : > { %1577 = vrsqrt.f32 %v643_v23  ;;  %v696_v37 = vpack.c.bf16 %v685_v7, %v684_v41  ;;  %1495 = vmatprep.subr.bf16.mxu0 %v1543_v61  ;;  %v1546_v23 = vld [vmem:[%s2156_s5 + $0x28] sm:$0xff]  }
 0x1bd   : > { %1579 = vrsqrt.f32 %v642_v36 }
 0x1be   : > { %1483 = vmatprep.mubr.bf16.mxu1 %v696_v37 }
 0x1bf   : > { %1484 = vmatmul.mubr.bf16.gmra.mrb[8].mxu1 %v697_v2  ;;  %1496 = vmatpush3.bf16.msra.mxu0 %v1543_v61 }
 0x1c0   : > { %1497 = vmatprep.subr.bf16.mxu0 %v1544_v33 }
 0x1c2   : > { %v1574_v42 = vpop.eup %1573 }
 0x1c3   : > { %v1576_v45 = vpop.eup %1575  ;;  %v673_v47 = vmul.f32 %v1574_v42, %v625_v17  ;;  %1498 = vmatpush3.bf16.msra.mxu0 %v1544_v33 }
 0x1c4   : > { %v672_v48 = vmul.f32 %v1576_v45, %v624_v44  ;;  %1499 = vmatprep.subr.bf16.mxu0 %v1545_v4  ;;  %v1547_v45 = vld [vmem:[%s2156_s5 + $0x30] sm:$0xff]  }
 0x1c5   : > { %v689_v52 = vmax.f32 %v673_v47, 0.0 }
 0x1c6   : > { %v1578_v53 = vpop.eup %1577  ;;  %v688_v50 = vmax.f32 %v672_v48, 0.0  ;;  %v1548_v48 = vld [vmem:[%s2156_s5 + $0x38] sm:$0xff]  }
 0x1c7   : > { %v1580_v55 = vpop.eup %1579  ;;  %v675_v56 = vmul.f32 %v1578_v53, %v627_v51  ;;  %1500 = vmatpush3.bf16.msra.mxu0 %v1545_v4 }
 0x1c8   : > { %v698_v30 = vpack.c.bf16 %v689_v52, %v688_v50  ;;  %v674_v35 = vmul.f32 %v1580_v55, %v626_v54  ;;  %1501 = vmatprep.subr.bf16.mxu0 %v1546_v23 }
 0x1c9   : > { %v691_v60 = vmax.f32 %v675_v56, 0.0 }
 0x1ca   : > { %1487 = vmatprep.mubr.bf16.mxu1 %v698_v30  ;;  %v690_v13 = vmax.f32 %v674_v35, 0.0 }
 0x1cb   : > { %1502 = vmatpush3.bf16.msra.mxu0 %v1546_v23 }
 0x1cc   : > { %v699_v15 = vpack.c.bf16 %v691_v60, %v690_v13  ;;  %1503 = vmatprep.subr.bf16.mxu0 %v1547_v45 }
 0x1ce   : > { %1488 = vmatmul.mubr.bf16.gmra.mrb[12].mxu1 %v699_v15 }
 0x1cf   : > { %1504 = vmatpush3.bf16.msra.mxu0 %v1547_v45 }
 0x1d0   : > { %1505 = vmatprep.subr.bf16.mxu0 %v1548_v48 }
 0x1d3   : > { %1506 = vmatpush3.bf16.msra.mxu0 %v1548_v48 }
 0x272   : > { %v1477_v10 = vpop.f32.mrb[0].mxu1 }
 0x273   : > { %v1911_v57 = vadd.f32 %v1477_v10, %v1908_v14  ;;  %v805_v11 = vpop.f32.mrb[1].mxu1 }
 0x274   : > { %v1478_v59 = vpop.f32.mrb[2].mxu1  ;;  %v1918_v6 = vadd.f32 %v1908_v14, %v805_v11 }
 0x275   : > { %v1914_v3 = vadd.f32 %v1478_v59, %v1908_v14  ;;  %872 = vadd.xlane.f32.xlu0 %v1911_v57  ;;  %v808_v5 = vpop.f32.mrb[3].mxu1  ;;  %v918_v12 = vmul.f32 %v1911_v57, %v1911_v57 }
 0x276   : > { %v1922_v9 = vadd.f32 %v1908_v14, %v808_v5  ;;  %v916_v18 = vmul.f32 %v1918_v6, %v1918_v6 }
 0x277   : > { %874 = vadd.xlane.f32.xlu1 %v1914_v3  ;;  %v919_v16 = vmul.f32 %v1914_v3, %v1914_v3 }
 0x278   : > { %v917_v19 = vmul.f32 %v1922_v9, %v1922_v9 }
 0x279   : > { %868 = vadd.xlane.f32.xlu0 %v1918_v6 }
 0x27b   : > { %870 = vadd.xlane.f32.xlu1 %v1922_v9 }
 0x27d   : > { %936 = vadd.xlane.f32.xlu0 %v918_v12 }
 0x27f   : > { %938 = vadd.xlane.f32.xlu1 %v919_v16 }
 0x281   : > { %932 = vadd.xlane.f32.xlu0 %v916_v18 }
 0x282   : > { %v1481_v20 = vpop.f32.mrb[4].mxu1 }
 0x283   : > { %v1935_v22 = vadd.f32 %v1481_v20, %v1908_v14  ;;  %934 = vadd.xlane.f32.xlu1 %v917_v19  ;;  %v821_v24 = vpop.f32.mrb[5].mxu1 }
 0x284   : > { %v1482_v25 = vpop.f32.mrb[6].mxu1  ;;  %v1942_v29 = vadd.f32 %v1908_v14, %v821_v24 }
 0x285   : > { %v1938_v26 = vadd.f32 %v1482_v25, %v1908_v14  ;;  %880 = vadd.xlane.f32.xlu0 %v1935_v22  ;;  %v824_v27 = vpop.f32.mrb[7].mxu1  ;;  %v922_v32 = vmul.f32 %v1935_v22, %v1935_v22 }
 0x286   : > { %v1946_v31 = vadd.f32 %v1908_v14, %v824_v27  ;;  %v920_v39 = vmul.f32 %v1942_v29, %v1942_v29 }
 0x287   : > { %882 = vadd.xlane.f32.xlu1 %v1938_v26  ;;  %v923_v38 = vmul.f32 %v1938_v26, %v1938_v26 }
 0x288   : > { %v921_v0 = vmul.f32 %v1946_v31, %v1946_v31 }
 0x289   : > { %876 = vadd.xlane.f32.xlu0 %v1942_v29 }
 0x28b   : > { %878 = vadd.xlane.f32.xlu1 %v1946_v31 }
 0x28d   : > { %944 = vadd.xlane.f32.xlu0 %v922_v32 }
 0x28f   : > { %946 = vadd.xlane.f32.xlu1 %v923_v38 }
 0x291   : > { %940 = vadd.xlane.f32.xlu0 %v920_v39 }
 0x292   : > { %v1485_v62 = vpop.f32.mrb[8].mxu1 }
 0x293   : > { %v1965_v58 = vadd.f32 %v1485_v62, %v1908_v14  ;;  %942 = vadd.xlane.f32.xlu1 %v921_v0  ;;  %v837_v40 = vpop.f32.mrb[9].mxu1 }
 0x294   : > { %v1486_v63 = vpop.f32.mrb[10].mxu1  ;;  %v1975_v8 = vadd.f32 %v1908_v14, %v837_v40 }
 0x295   : > { %v1971_v28 = vadd.f32 %v1486_v63, %v1908_v14  ;;  %888 = vadd.xlane.f32.xlu0 %v1965_v58  ;;  %v840_v1 = vpop.f32.mrb[11].mxu1  ;;  %v926_v49 = vmul.f32 %v1965_v58, %v1965_v58 }
 0x296   : > { %v1982_v46 = vadd.f32 %v1908_v14, %v840_v1  ;;  %v924_v21 = vmul.f32 %v1975_v8, %v1975_v8 }
 0x297   : > { %890 = vadd.xlane.f32.xlu1 %v1971_v28  ;;  %v927_v7 = vmul.f32 %v1971_v28, %v1971_v28 }
 0x298   : > { %v925_v36 = vmul.f32 %v1982_v46, %v1982_v46 }
 0x299   : > { %884 = vadd.xlane.f32.xlu0 %v1975_v8 }
 0x29b   : > { %886 = vadd.xlane.f32.xlu1 %v1982_v46 }
 0x29d   : > { %952 = vadd.xlane.f32.xlu0 %v926_v49 }
 0x29f   : > { %954 = vadd.xlane.f32.xlu1 %v927_v7 }
 0x2a1   : > { %948 = vadd.xlane.f32.xlu0 %v924_v21  ;;  %v1489_v41 = vpop.f32.mrb[12].mxu1 }
 0x2a2   : > { %v2001_v37 = vadd.f32 %v1489_v41, %v1908_v14  ;;  %v853_v2 = vpop.f32.mrb[13].mxu1 }
 0x2a3   : > { %950 = vadd.xlane.f32.xlu1 %v925_v36  ;;  %v1490_v17 = vpop.f32.mrb[14].mxu1  ;;  %v2011_v47 = vadd.f32 %v1908_v14, %v853_v2 }
 0x2a4   : > { %v2004_v42 = vadd.f32 %v1490_v17, %v1908_v14  ;;  %v856_v44 = vpop.f32.mrb[15].mxu1  ;;  %v930_v54 = vmul.f32 %v2001_v37, %v2001_v37 }
 0x2a5   : > { %896 = vadd.xlane.f32.xlu0 %v2001_v37  ;;  %v2018_v51 = vadd.f32 %v1908_v14, %v856_v44  ;;  %v928_v52 = vmul.f32 %v2011_v47, %v2011_v47 }
 0x2a6   : > { %v931_v50 = vmul.f32 %v2004_v42, %v2004_v42 }
 0x2a7   : > { %898 = vadd.xlane.f32.xlu1 %v2004_v42  ;;  %v929_v53 = vmul.f32 %v2018_v51, %v2018_v51 }
 0x2a9   : > { %892 = vadd.xlane.f32.xlu0 %v2011_v47 }
 0x2ab   : > { %894 = vadd.xlane.f32.xlu1 %v2018_v51 }
 0x2ad   : > { %956 = vadd.xlane.f32.xlu0 %v928_v52 }
 0x2af   : > { %958 = vadd.xlane.f32.xlu1 %v929_v53 }
 0x2b1   : > { %960 = vadd.xlane.f32.xlu0 %v930_v54 }
 0x2b3   : > { %962 = vadd.xlane.f32.xlu1 %v931_v50 }
 0x302   : > { %v873_v55 = vpop.xlane.xlu0 %872 }
 0x303   : > { %v2030_v35 = vmul.f32 0.03125, %v873_v55 }
 0x304   : > { %v875_v56 = vpop.xlane.xlu1 %874 }
 0x305   : > { %v2032_v13 = vmul.f32 0.03125, %v875_v56  ;;  %v982_v14 = vmul.f32 %v2030_v35, %v2030_v35 }
 0x306   : > { %v869_v30 = vpop.xlane.xlu0 %868 }
 0x307   : > { %v2036_v10 = vmul.f32 0.03125, %v869_v30  ;;  %v983_v5 = vmul.f32 %v2032_v13, %v2032_v13  ;;  %v1031_v50 = vsub.f32 %v1914_v3, %v2032_v13 }
 0x308   : > { %v871_v60 = vpop.xlane.xlu1 %870 }
 0x309   : > { %v2040_v12 = vmul.f32 0.03125, %v871_v60  ;;  %v980_v20 = vmul.f32 %v2036_v10, %v2036_v10 }
 0x30a   : > { %v937_v15 = vpop.xlane.xlu0 %936 }
 0x30b   : > { %v966_v11 = vmul.f32 0.03125, %v937_v15  ;;  %v981_v34 = vmul.f32 %v2040_v12, %v2040_v12 }
 0x30c   : > { %v939_v59 = vpop.xlane.xlu1 %938 }
 0x30d   : > { %v998_v16 = vsub.f32 %v966_v11, %v982_v14  ;;  %v967_v18 = vmul.f32 0.03125, %v939_v59  ;;  %v1030_v59 = vsub.f32 %v1911_v57, %v2030_v35 }
 0x30e   : > { %v933_v19 = vpop.xlane.xlu0 %932 }
 0x30f   : > { %v1014_v24 = vmax.f32 %v998_v16, 0.0  ;;  %v999_v25 = vsub.f32 %v967_v18, %v983_v5  ;;  %v964_v27 = vmul.f32 0.03125, %v933_v19  ;;  %v1028_v5 = vsub.f32 %v1918_v6, %v2036_v10 }
 0x310   : > { %v935_v32 = vpop.xlane.xlu1 %934 }
 0x311   : > { %v1015_v38 = vmax.f32 %v999_v25, 0.0  ;;  %v996_v39 = vsub.f32 %v964_v27, %v980_v20  ;;  %v965_v43 = vmul.f32 0.03125, %v935_v32  ;;  %v1046_v0 = vadd.f32 1e-08, %v1014_v24 }
 0x312   : > { %v881_v62 = vpop.xlane.xlu0 %880  ;;  %v1029_v25 = vsub.f32 %v1922_v9, %v2040_v12 }
 0x313   : > { %v1047_v40 = vadd.f32 1e-08, %v1015_v38  ;;  %v1012_v63 = vmax.f32 %v996_v39, 0.0  ;;  %v997_v61 = vsub.f32 %v965_v43, %v981_v34  ;;  %v2046_v21 = vmul.f32 0.03125, %v881_v62 }
 0x314   : > { %v883_v1 = vpop.xlane.xlu1 %882 }
 0x315   : > { %1581 = vrsqrt.f32 %v1047_v40  ;;  %v1044_v33 = vadd.f32 1e-08, %v1012_v63  ;;  %v1013_v49 = vmax.f32 %v997_v61, 0.0  ;;  %v2048_v41 = vmul.f32 0.03125, %v883_v1 }
 0x316   : > { %1583 = vrsqrt.f32 %v1046_v0  ;;  %v877_v4 = vpop.xlane.xlu0 %876  ;;  %v986_v2 = vmul.f32 %v2046_v21, %v2046_v21 }
 0x317   : > { %1585 = vrsqrt.f32 %v1044_v33  ;;  %v1045_v7 = vadd.f32 1e-08, %v1013_v49  ;;  %v2052_v17 = vmul.f32 0.03125, %v877_v4  ;;  %v987_v52 = vmul.f32 %v2048_v41, %v2048_v41 }
 0x318   : > { %v879_v23 = vpop.xlane.xlu1 %878 }
 0x319   : > { %1587 = vrsqrt.f32 %v1045_v7  ;;  %v2054_v45 = vmul.f32 0.03125, %v879_v23  ;;  %v984_v30 = vmul.f32 %v2052_v17, %v2052_v17 }
 0x31a   : > { %v945_v36 = vpop.xlane.xlu0 %944 }
 0x31b   : > { %v970_v44 = vmul.f32 0.03125, %v945_v36  ;;  %v985_v16 = vmul.f32 %v2054_v45, %v2054_v45 }
 0x31c   : > { %v947_v48 = vpop.xlane.xlu1 %946 }
 0x31d   : > { %v1002_v53 = vsub.f32 %v970_v44, %v986_v2  ;;  %v971_v54 = vmul.f32 0.03125, %v947_v48 }
 0x31e   : > { %v941_v55 = vpop.xlane.xlu0 %940 }
 0x31f   : > { %v1582_v56 = vpop.eup %1581  ;;  %v1018_v60 = vmax.f32 %v1002_v53, 0.0  ;;  %v1003_v15 = vsub.f32 %v971_v54, %v987_v52  ;;  %v968_v14 = vmul.f32 0.03125, %v941_v55 }
 0x320   : > { %v1584_v11 = vpop.eup %1583  ;;  %v943_v18 = vpop.xlane.xlu1 %942  ;;  %v1079_v24 = vmul.f32 %v1582_v56, %v1031_v50  ;;  %v1035_v56 = vsub.f32 %v1938_v26, %v2048_v41 }
 0x321   : > { %v1586_v3 = vpop.eup %1585  ;;  %v1019_v13 = vmax.f32 %v1003_v15, 0.0  ;;  %v1000_v19 = vsub.f32 %v968_v14, %v984_v30  ;;  %v969_v20 = vmul.f32 0.03125, %v943_v18  ;;  %v1050_v27 = vadd.f32 1e-08, %v1018_v60 }
 0x322   : > { %v889_v32 = vpop.xlane.xlu0 %888  ;;  %v1076_v34 = vmul.f32 %v1586_v3, %v1028_v5  ;;  %v1078_v6 = vmul.f32 %v1584_v11, %v1030_v59  ;;  %v1095_v40 = vmax.f32 %v1079_v24, 0.0  ;;  %v1032_v18 = vsub.f32 %v1942_v29, %v2052_v17 }
 0x323   : > { %v1588_v38 = vpop.eup %1587  ;;  %v1051_v57 = vadd.f32 1e-08, %v1019_v13  ;;  %v1016_v35 = vmax.f32 %v1000_v19, 0.0  ;;  %v1001_v39 = vsub.f32 %v969_v20, %v985_v16  ;;  %v2070_v12 = vmul.f32 0.03125, %v889_v32 }
 0x324   : > { %v891_v10 = vpop.xlane.xlu1 %890  ;;  %v1077_v43 = vmul.f32 %v1588_v38, %v1029_v25  ;;  %v1092_v61 = vmax.f32 %v1076_v34, 0.0  ;;  %v1094_v33 = vmax.f32 %v1078_v6, 0.0  ;;  %v1034_v16 = vsub.f32 %v1935_v22, %v2046_v21 }
 0x325   : > { %1589 = vrsqrt.f32 %v1051_v57  ;;  %v1048_v0 = vadd.f32 1e-08, %v1016_v35  ;;  %v1017_v62 = vmax.f32 %v1001_v39, 0.0  ;;  %v2072_v7 = vmul.f32 0.03125, %v891_v10 }
 0x326   : > { %1591 = vrsqrt.f32 %v1050_v27  ;;  %v885_v63 = vpop.xlane.xlu0 %884  ;;  %v1093_v1 = vmax.f32 %v1077_v43, 0.0  ;;  %v1109_v23 = vpack.c.bf16 %v1095_v40, %v1094_v33  ;;  %v990_v2 = vmul.f32 %v2070_v12, %v2070_v12 }
 0x327   : > { %1593 = vrsqrt.f32 %v1048_v0  ;;  %v1049_v9 = vadd.f32 1e-08, %v1017_v62  ;;  %v2076_v44 = vmul.f32 0.03125, %v885_v63  ;;  %v991_v54 = vmul.f32 %v2072_v7, %v2072_v7 }
 0x328   : > { %v887_v49 = vpop.xlane.xlu1 %886  ;;  %v1108_v4 = vpack.c.bf16 %v1093_v1, %v1092_v61  ;;  %v1033_v27 = vsub.f32 %v1946_v31, %v2054_v45 }
 0x329   : > { %1595 = vrsqrt.f32 %v1049_v9  ;;  %v2078_v52 = vmul.f32 0.03125, %v887_v49  ;;  %v988_v15 = vmul.f32 %v2076_v44, %v2076_v44 }
 0x32a   : > { %1507 = vmatprep.mubr.bf16.mxu0 %v1108_v4  ;;  %v953_v36 = vpop.xlane.xlu0 %952 }
 0x32b   : > { %v974_v48 = vmul.f32 0.03125, %v953_v36  ;;  %1508 = vmatmul.mubr.bf16.vlgmr.msra.gmra.mrb[16].mxu0 %v1109_v23  ;;  %v989_v3 = vmul.f32 %v2078_v52, %v2078_v52 }
 0x32c   : > { %v955_v53 = vpop.xlane.xlu1 %954 }
 0x32d   : > { %v1006_v50 = vsub.f32 %v974_v48, %v990_v2  ;;  %v975_v55 = vmul.f32 0.03125, %v955_v53 }
 0x32e   : > { %v949_v30 = vpop.xlane.xlu0 %948 }
 0x32f   : > { %v1590_v60 = vpop.eup %1589  ;;  %v1022_v14 = vmax.f32 %v1006_v50, 0.0  ;;  %v1007_v11 = vsub.f32 %v975_v55, %v991_v54  ;;  %v972_v59 = vmul.f32 0.03125, %v949_v30  ;;  %v1039_v55 = vsub.f32 %v1971_v28, %v2072_v7 }
 0x330   : > { %v1592_v5 = vpop.eup %1591  ;;  %v951_v13 = vpop.xlane.xlu1 %950  ;;  %v1083_v26 = vmul.f32 %v1590_v60, %v1035_v56  ;;  %v1037_v7 = vsub.f32 %v1982_v46, %v2078_v52 }
 0x331   : > { %v1594_v41 = vpop.eup %1593  ;;  %v1054_v19 = vadd.f32 1e-08, %v1022_v14  ;;  %v1023_v20 = vmax.f32 %v1007_v11, 0.0  ;;  %v1004_v24 = vsub.f32 %v972_v59, %v988_v15  ;;  %v973_v25 = vmul.f32 0.03125, %v951_v13 }
 0x332   : > { %v897_v32 = vpop.xlane.xlu0 %896  ;;  %v1080_v34 = vmul.f32 %v1594_v41, %v1032_v18  ;;  %v1082_v29 = vmul.f32 %v1592_v5, %v1034_v16  ;;  %v1099_v10 = vmax.f32 %v1083_v26, 0.0  ;;  %v1038_v59 = vsub.f32 %v1965_v58, %v2070_v12 }
 0x333   : > { %v1596_v38 = vpop.eup %1595  ;;  %v1055_v22 = vadd.f32 1e-08, %v1023_v20  ;;  %v1020_v21 = vmax.f32 %v1004_v24, 0.0  ;;  %v1005_v57 = vsub.f32 %v973_v25, %v989_v3  ;;  %1597 = vrsqrt.f32 %v1054_v19 }
 0x334   : > { %v899_v17 = vpop.xlane.xlu1 %898  ;;  %v1081_v35 = vmul.f32 %v1596_v38, %v1033_v27  ;;  %v1096_v0 = vmax.f32 %v1080_v34, 0.0  ;;  %v1098_v31 = vmax.f32 %v1082_v29, 0.0  ;;  %v914_v49 = vmul.f32 0.03125, %v897_v32 }
 0x335   : > { %1599 = vrsqrt.f32 %v1055_v22  ;;  %v1052_v39 = vadd.f32 1e-08, %v1020_v21  ;;  %v1021_v6 = vmax.f32 %v1005_v57, 0.0  ;;  %v915_v36 = vmul.f32 0.03125, %v899_v17 }
 0x336   : > { %v893_v43 = vpop.xlane.xlu0 %892  ;;  %v1097_v62 = vmax.f32 %v1081_v35, 0.0  ;;  %v1111_v9 = vpack.c.bf16 %v1099_v10, %v1098_v31  ;;  %v994_v60 = vmul.f32 %v914_v49, %v914_v49  ;;  %v1036_v5 = vsub.f32 %v1975_v8, %v2076_v44 }
 0x337   : > { %1601 = vrsqrt.f32 %v1052_v39  ;;  %v1053_v40 = vadd.f32 1e-08, %v1021_v6  ;;  %v912_v45 = vmul.f32 0.03125, %v893_v43  ;;  %v995_v16 = vmul.f32 %v915_v36, %v915_v36 }
 0x338   : > { %v895_v63 = vpop.xlane.xlu1 %894  ;;  %v1110_v61 = vpack.c.bf16 %v1097_v62, %v1096_v0  ;;  %v1042_v10 = vsub.f32 %v2001_v37, %v914_v49  ;;  %v1043_v62 = vsub.f32 %v2004_v42, %v915_v36  ;;  %v1386_v37 = vld [vmem:[%s2157_s6] ss:$0 sm:$0xff] }
 0x339   : > { %1603 = vrsqrt.f32 %v1053_v40  ;;  %v913_v1 = vmul.f32 0.03125, %v895_v63  ;;  %v992_v4 = vmul.f32 %v912_v45, %v912_v45  ;;  %v1040_v52 = vsub.f32 %v2011_v47, %v912_v45 }
 0x33a   : > { %1511 = vmatprep.mubr.bf16.mxu0 %v1110_v61  ;;  %v957_v33 = vpop.xlane.xlu0 %956 }
 0x33b   : > { %v976_v23 = vmul.f32 0.03125, %v957_v33  ;;  %1512 = vmatmul.mubr.bf16.gmra.mrb[20].mxu0 %v1111_v9  ;;  %v993_v48 = vmul.f32 %v913_v1, %v913_v1  ;;  %v1041_v35 = vsub.f32 %v2018_v51, %v913_v1 }
 0x33c   : > { %v959_v2 = vpop.xlane.xlu1 %958 }
 0x33d   : > { %v1008_v53 = vsub.f32 %v976_v23, %v992_v4  ;;  %v977_v54 = vmul.f32 0.03125, %v959_v2  ;;  %v1598_v50 = vpop.eup %1597 }
 0x33e   : > { %v961_v56 = vpop.xlane.xlu0 %960  ;;  %v1086_v24 = vmul.f32 %v1598_v50, %v1038_v59 }
 0x33f   : > { %v1600_v30 = vpop.eup %1599  ;;  %v1024_v15 = vmax.f32 %v1008_v53, 0.0  ;;  %v1009_v14 = vsub.f32 %v977_v54, %v993_v48  ;;  %v978_v11 = vmul.f32 0.03125, %v961_v56 }
 0x340   : > { %v963_v18 = vpop.xlane.xlu1 %962  ;;  %v1087_v3 = vmul.f32 %v1600_v30, %v1039_v55  ;;  %v1102_v57 = vmax.f32 %v1086_v24, 0.0 }
 0x341   : > { %v1602_v13 = vpop.eup %1601  ;;  %v1056_v26 = vadd.f32 1e-08, %v1024_v15  ;;  %v1025_v41 = vmax.f32 %v1009_v14, 0.0  ;;  %v1010_v19 = vsub.f32 %v978_v11, %v994_v60  ;;  %v979_v28 = vmul.f32 0.03125, %v963_v18 }
 0x342   : > { %v1084_v20 = vmul.f32 %v1602_v13, %v1036_v5  ;;  %v1103_v34 = vmax.f32 %v1087_v3, 0.0 }
 0x343   : > { %v1604_v25 = vpop.eup %1603  ;;  %1605 = vrsqrt.f32 %v1056_v26  ;;  %v1057_v27 = vadd.f32 1e-08, %v1025_v41  ;;  %v1026_v58 = vmax.f32 %v1010_v19, 0.0  ;;  %v1011_v12 = vsub.f32 %v979_v28, %v995_v16 }
 0x344   : > { %v1085_v32 = vmul.f32 %v1604_v25, %v1037_v7  ;;  %v1100_v38 = vmax.f32 %v1084_v20, 0.0  ;;  %v1113_v46 = vpack.c.bf16 %v1103_v34, %v1102_v57 }
 0x345   : > { %1607 = vrsqrt.f32 %v1057_v27  ;;  %v1058_v8 = vadd.f32 1e-08, %v1026_v58  ;;  %v1027_v44 = vmax.f32 %v1011_v12, 0.0 }
 0x346   : > { %v1101_v22 = vmax.f32 %v1085_v32, 0.0 }
 0x347   : > { %1609 = vrsqrt.f32 %v1058_v8  ;;  %v1059_v21 = vadd.f32 1e-08, %v1027_v44 }
 0x348   : > { %v1112_v29 = vpack.c.bf16 %v1101_v22, %v1100_v38 }
 0x349   : > { %1611 = vrsqrt.f32 %v1059_v21 }
 0x34a   : > { %1515 = vmatprep.mubr.bf16.mxu0 %v1112_v29 }
 0x34b   : > { %1516 = vmatmul.mubr.bf16.gmra.mrb[24].mxu0 %v1113_v46 }
 0x34d   : > { %v1606_v17 = vpop.eup %1605 }
 0x34e   : > { %v1088_v39 = vmul.f32 %v1606_v17, %v1040_v52 }
 0x34f   : > { %v1608_v6 = vpop.eup %1607 }
 0x350   : > { %v1089_v43 = vmul.f32 %v1608_v6, %v1041_v35  ;;  %v1104_v40 = vmax.f32 %v1088_v39, 0.0 }
 0x351   : > { %v1610_v0 = vpop.eup %1609 }
 0x352   : > { %v1105_v31 = vmax.f32 %v1089_v43, 0.0  ;;  %v1090_v63 = vmul.f32 %v1610_v0, %v1042_v10 }
 0x353   : > { %v1612_v61 = vpop.eup %1611 }
 0x354   : > { %v1114_v9 = vpack.c.bf16 %v1105_v31, %v1104_v40  ;;  %v1091_v33 = vmul.f32 %v1612_v61, %v1043_v62  ;;  %v1106_v47 = vmax.f32 %v1090_v63, 0.0 }
 0x356   : > { %1519 = vmatprep.mubr.bf16.mxu0 %v1114_v9  ;;  %v1107_v45 = vmax.f32 %v1091_v33, 0.0 }
 0x358   : > { %v1115_v4 = vpack.c.bf16 %v1107_v45, %v1106_v47 }
 0x35a   : > { %1520 = vmatmul.mubr.bf16.gmra.mrb[28].mxu0 %v1115_v4 }
 0x3fe   : > { %v1509_v42 = vpop.f32.mrb[16].mxu0 }
 0x3ff   : > { %v1230_v51 = vadd.f32 %v1509_v42, %v1386_v37  ;;  %v1221_v1 = vpop.f32.mrb[17].mxu0 }
 0x400   : > { %v1222_v49 = vadd.f32 %v1386_v37, %v1221_v1  ;;  %v1510_v23 = vpop.f32.mrb[18].mxu0 }
 0x401   : > { %1287 = vst.msk [vmem:[%s2114_s12 + $0x10] sm:$0xff] %vm1284_vm1, %v1230_v51  ;;  %v1233_v36 = vadd.f32 %v1510_v23, %v1386_v37  ;;  %v1224_v2 = vpop.f32.mrb[19].mxu0 }
 0x402   : > { %1285 = vst.msk [vmem:[%s2114_s12] sm:$0xff] %vm1284_vm1, %v1222_v49  ;;  %v1225_v48 = vadd.f32 %v1386_v37, %v1224_v2 }
 0x403   : > { %1288 = vst.msk [vmem:[%s2114_s12 + $0x18] sm:$0xff] %vm1284_vm1, %v1233_v36 }
 0x404   : > { %1286 = vst.msk [vmem:[%s2114_s12 + $0x8] sm:$0xff] %vm1284_vm1, %v1225_v48 }
 0x40e   : > { %v1513_v53 = vpop.f32.mrb[20].mxu0 }
 0x40f   : > { %v1246_v54 = vadd.f32 %v1513_v53, %v1386_v37  ;;  %v1237_v50 = vpop.f32.mrb[21].mxu0 }
 0x410   : > { %v1238_v55 = vadd.f32 %v1386_v37, %v1237_v50  ;;  %v1514_v56 = vpop.f32.mrb[22].mxu0 }
 0x411   : > { %1291 = vst.msk [vmem:[%s2114_s12 + $0x30] sm:$0xff] %vm1284_vm1, %v1246_v54  ;;  %v1249_v30 = vadd.f32 %v1514_v56, %v1386_v37  ;;  %v1240_v60 = vpop.f32.mrb[23].mxu0 }
 0x412   : > { %1289 = vst.msk [vmem:[%s2114_s12 + $0x20] sm:$0xff] %vm1284_vm1, %v1238_v55  ;;  %v1241_v15 = vadd.f32 %v1386_v37, %v1240_v60 }
 0x413   : > { %1292 = vst.msk [vmem:[%s2114_s12 + $0x38] sm:$0xff] %vm1284_vm1, %v1249_v30 }
 0x414   : > { %1290 = vst.msk [vmem:[%s2114_s12 + $0x28] sm:$0xff] %vm1284_vm1, %v1241_v15 }
 0x41e   : > { %v1517_v14 = vpop.f32.mrb[24].mxu0 }
 0x41f   : > { %v1262_v11 = vadd.f32 %v1517_v14, %v1386_v37  ;;  %v1253_v59 = vpop.f32.mrb[25].mxu0 }
 0x420   : > { %v1254_v5 = vadd.f32 %v1386_v37, %v1253_v59  ;;  %v1518_v16 = vpop.f32.mrb[26].mxu0 }
 0x421   : > { %1295 = vst.msk [vmem:[%s2114_s12 + $0x50] sm:$0xff] %vm1284_vm1, %v1262_v11  ;;  %v1265_v18 = vadd.f32 %v1518_v16, %v1386_v37  ;;  %v1256_v3 = vpop.f32.mrb[27].mxu0 }
 0x422   : > { %1293 = vst.msk [vmem:[%s2114_s12 + $0x40] sm:$0xff] %vm1284_vm1, %v1254_v5  ;;  %v1257_v13 = vadd.f32 %v1386_v37, %v1256_v3 }
 0x423   : > { %1296 = vst.msk [vmem:[%s2114_s12 + $0x58] sm:$0xff] %vm1284_vm1, %v1265_v18 }
 0x424   : > { %1294 = vst.msk [vmem:[%s2114_s12 + $0x48] sm:$0xff] %vm1284_vm1, %v1257_v13 }
 0x42d   : > { %v1521_v26 = vpop.f32.mrb[28].mxu0 }
 0x42e   : > { %v1278_v41 = vadd.f32 %v1521_v26, %v1386_v37  ;;  %v1269_v19 = vpop.f32.mrb[29].mxu0 }
 0x42f   : > { %v1270_v28 = vadd.f32 %v1386_v37, %v1269_v19  ;;  %v1522_v7 = vpop.f32.mrb[30].mxu0 }
 0x430   : > { %1299 = vst.msk [vmem:[%s2114_s12 + $0x70] sm:$0xff] %vm1284_vm1, %v1278_v41  ;;  %v1281_v20 = vadd.f32 %v1522_v7, %v1386_v37  ;;  %v1272_v24 = vpop.f32.mrb[31].mxu0 }
 0x431   : > { %1297 = vst.msk [vmem:[%s2114_s12 + $0x60] sm:$0xff] %vm1284_vm1, %v1270_v28  ;;  %v1273_v25 = vadd.f32 %v1386_v37, %v1272_v24 }
 0x432   : > { %1300 = vst.msk [vmem:[%s2114_s12 + $0x78] sm:$0xff] %vm1284_vm1, %v1281_v20 }
 0x433   : > { %1298 = vst.msk [vmem:[%s2114_s12 + $0x68] sm:$0xff] %vm1284_vm1, %v1273_v25 }
 0x434 PF: > { %s17_s24 = sadd.s32 1, %s1619_s24  }
 0x435   : > { %p14_p4 = scmp.ge.s32.totalorder %s17_s24, 4  }
 0x437   :  { %16 = sbr.rel (!%p14_p4) target bundleno = 1 (0x1), region = 78 }

</bundles_post_ra>
